<compile_context>
chip_gen: v7x
topology: tpu7x:2x2x1
jax: 0.10.0
libtpu: 0.0.40
codegen_flags: <defaults>
</compile_context>

<pallas_src>
import math

import jax
import jax.numpy as jnp
from jax import lax
from jax.experimental import pallas as pl
from jax.experimental.pallas import tpu as pltpu


def _probe_tile_kernel(xi_ref, xj_ref, w_ref, o_ref):
    # xi_ref: (TI, D) row block of one sentence
    # xj_ref: (TJ, D) column block of the same sentence
    # w_ref:  (D, R)  projection matrix (resident; constant index_map)
    # o_ref:  (TI, TJ) squared pairwise distances for this tile
    w = w_ref[...]

    # MXU: project both tiles onto the rank-R probe space.
    ti = jnp.dot(xi_ref[...], w, preferred_element_type=jnp.float32)   # (TI, R)
    tj = jnp.dot(xj_ref[...], w, preferred_element_type=jnp.float32)   # (TJ, R)

    # Squared norms of the projected rows.
    sqi = jnp.sum(ti * ti, axis=-1, keepdims=True)                     # (TI, 1)
    sqj = jnp.sum(tj * tj, axis=-1, keepdims=True)                     # (TJ, 1)

    # MXU: Gram tile  t_i . t_j  (contract last axes; no materialized
    # transpose of the operands).
    g = lax.dot_general(
        ti, tj, (((1,), (1,)), ((), ())),
        preferred_element_type=jnp.float32,
    )                                                                  # (TI, TJ)

    # ||t_i - t_j||^2 = ||t_i||^2 + ||t_j||^2 - 2 * t_i . t_j
    dist = sqi + jnp.transpose(sqj) - 2.0 * g
    o_ref[...] = jnp.maximum(dist, 0.0)


def _round_up(x, m):
    return (x + m - 1) // m * m


def _vmem_bytes_estimate(ti, tj, d, r):
    # double-buffered row/col input blocks + output block + resident proj.
    return 4 * (2 * (ti * d + tj * d + ti * tj) + 2 * d * r)


def _choose_tiles(s, d, r):
    # Whole-sentence blocks (no pad, no slice) when they fit comfortably
    # under v5e's 16 MiB default scoped-VMEM budget.
    if _vmem_bytes_estimate(s, s, d, r) <= (8 << 20):
        return s, s
    # Otherwise tile the (i, j) output space. TJ multiple of 128 (lane-dense
    # unmasked stores), TI multiple of 8.
    ti, tj = 256, 512
    while _vmem_bytes_estimate(ti, tj, d, r) > (24 << 20) and (ti > 8 or tj > 128):
        if tj > 128:
            tj //= 2
        else:
            ti //= 2
    return ti, tj


def two_word_psd_probe(batch, proj, *, ti=None, tj=None):
    """batch: (B, S, D) float32, proj: (D, R) float32 -> (B, S, S) float32."""
    B, S, D = batch.shape
    Dw, R = proj.shape
    assert D == Dw

    if ti is None or tj is None:
        auto_ti, auto_tj = _choose_tiles(S, D, R)
        ti = auto_ti if ti is None else ti
        tj = auto_tj if tj is None else tj

    # Pad the sequence axis only if the tile sizes require it (no-op on the
    # untiled probe-scale path where ti == tj == S).  Padded zero rows only
    # affect padded output entries, which are sliced off below.
    step = ti * tj // math.gcd(ti, tj)
    Sp = _round_up(S, step)
    if Sp != S:
        batch = jnp.pad(batch, ((0, 0), (0, Sp - S), (0, 0)))

    n_i, n_j = Sp // ti, Sp // tj

    est = _vmem_bytes_estimate(ti, tj, D, R)
    # Raise v5e's 16 MiB default; harmless (== default) on v6e/v7x; cap well
    # under v7x's 64 MiB physical VMEM.
    vmem_limit = int(min(max(est * 3 // 2 + (1 << 20), 32 << 20), 56 << 20))

    out = pl.pallas_call(
        _probe_tile_kernel,
        out_shape=jax.ShapeDtypeStruct((B, Sp, Sp), jnp.float32),
        grid_spec=pltpu.PrefetchScalarGridSpec(
            num_scalar_prefetch=0,
            # Leading "parallel" row-tile axis -> both v7x TensorCores stay
            # busy even for B == 1; innermost j axis so the row block and the
            # projection stay resident across the inner loop.
            grid=(n_i, B, n_j),
            in_specs=[
                pl.BlockSpec((pl.Squeezed(), ti, D), lambda i, b, j: (b, i, 0)),
                pl.BlockSpec((pl.Squeezed(), tj, D), lambda i, b, j: (b, j, 0)),
                pl.BlockSpec((D, R), lambda i, b, j: (0, 0)),
            ],
            out_specs=pl.BlockSpec(
                (pl.Squeezed(), ti, tj), lambda i, b, j: (b, i, j)
            ),
        ),
        compiler_params=pltpu.CompilerParams(
            dimension_semantics=("parallel", "parallel", "arbitrary"),
            vmem_limit_bytes=vmem_limit,
        ),
    )(batch, batch, proj)

    if Sp != S:
        out = out[:, :S, :S]
    return out


def _reference(batch, proj):
    # Pure-JAX reference (explicit-difference formulation, as in PyTorch).
    t = jnp.matmul(batch, proj)                                  # (B, S, R)
    diffs = t[:, :, None, :] - t[:, None, :, :]                  # (B, S, S, R)
    return jnp.sum(diffs ** 2, axis=-1)                          # (B, S, S)


if __name__ == "__main__":
    key = jax.random.PRNGKey(0)
    k_x, k_w, k_x2 = jax.random.split(key, 3)

    # Small shapes consistent with the module's forward:
    #   batch_size=2, max_seq_len=8, hidden_dim=32, probe_rank=16
    B, S, D, R = 2, 8, 32, 16
    batch = jax.random.normal(k_x, (B, S, D), dtype=jnp.float32)
    # nn.init.uniform_(proj, -0.05, 0.05) — deterministic synthetic init.
    proj = jax.random.uniform(
        k_w, (D, R), dtype=jnp.float32, minval=-0.05, maxval=0.05
    )

    # Untiled fast path (whole-sentence blocks, no pad / no slice).
    out = jax.block_until_ready(two_word_psd_probe(batch, proj))
    ref = _reference(batch, proj)
    assert out.shape == (B, S, S)
    assert jnp.allclose(out, ref, atol=1e-4, rtol=1e-4)

    # Also exercise the tiled (i, j) path with padding + slicing.
    B2, S2 = 1, 200
    batch2 = jax.random.normal(k_x2, (B2, S2, D), dtype=jnp.float32)
    out2 = jax.block_until_ready(two_word_psd_probe(batch2, proj, ti=64, tj=128))
    ref2 = _reference(batch2, proj)
    assert out2.shape == (B2, S2, S2)
    assert jnp.allclose(out2, ref2, atol=1e-4, rtol=1e-4)

    print("KERNEL_OK")
</pallas_src>

<mosaic_0001>
module attributes {stable_mosaic.version = 11 : i64} {
  func.func @_probe_tile_kernel(%arg0: i32, %arg1: i32, %arg2: i32, %arg3: memref<1x8x32xf32, #tpu.memory_space<vmem>>, %arg4: memref<1x8x32xf32, #tpu.memory_space<vmem>>, %arg5: memref<32x16xf32, #tpu.memory_space<vmem>>, %arg6: memref<1x8x8xf32, #tpu.memory_space<vmem>>) attributes {dimension_semantics = [#tpu.dimension_semantics<parallel>, #tpu.dimension_semantics<parallel>, #tpu.dimension_semantics<arbitrary>], iteration_bounds = array<i64: 1, 2, 1>, scalar_prefetch = 0 : i64, scratch_operands = 0 : i64, tpu.core_type = #tpu.core_type<tc>, window_params = [{transform_indices = @transform_0, window_bounds = array<i64: 1, 8, 32>}, {transform_indices = @transform_1, window_bounds = array<i64: 1, 8, 32>}, {pipeline_mode = #tpu.pipeline_mode<synchronous>, transform_indices = @transform_2, window_bounds = array<i64: 32, 16>}, {transform_indices = @transform_3, window_bounds = array<i64: 1, 8, 8>}]} {
    %c0 = arith.constant 0 : index
    %c0_0 = arith.constant 0 : index
    %0 = vector.load %arg5[%c0, %c0_0] : memref<32x16xf32, #tpu.memory_space<vmem>>, vector<32x16xf32>
    %c0_1 = arith.constant 0 : index
    %c0_2 = arith.constant 0 : index
    %c0_3 = arith.constant 0 : index
    %1 = vector.load %arg3[%c0_1, %c0_2, %c0_3] : memref<1x8x32xf32, #tpu.memory_space<vmem>>, vector<1x8x32xf32>
    %2 = vector.shape_cast %1 : vector<1x8x32xf32> to vector<8x32xf32>
    %cst = arith.constant dense<0.000000e+00> : vector<8x16xf32>
    %3 = tpu.matmul %2, %0, %cst {dimension_numbers = #tpu.dot_dimension_numbers<[1], [0], [0], [1], [0, 0, 1, 1], [], []>} : vector<8x32xf32>, vector<32x16xf32>, vector<8x16xf32> -> vector<8x16xf32>
    %c0_4 = arith.constant 0 : index
    %c0_5 = arith.constant 0 : index
    %c0_6 = arith.constant 0 : index
    %4 = vector.load %arg4[%c0_4, %c0_5, %c0_6] : memref<1x8x32xf32, #tpu.memory_space<vmem>>, vector<1x8x32xf32>
    %5 = vector.shape_cast %4 : vector<1x8x32xf32> to vector<8x32xf32>
    %cst_7 = arith.constant dense<0.000000e+00> : vector<8x16xf32>
    %6 = tpu.matmul %5, %0, %cst_7 {dimension_numbers = #tpu.dot_dimension_numbers<[1], [0], [0], [1], [0, 0, 1, 1], [], []>} : vector<8x32xf32>, vector<32x16xf32>, vector<8x16xf32> -> vector<8x16xf32>
    %7 = arith.mulf %3, %3 : vector<8x16xf32>
    %cst_8 = arith.constant dense<0.000000e+00> : vector<8xf32>
    %8 = vector.multi_reduction <add>, %7, %cst_8 [1] : vector<8x16xf32> to vector<8xf32>
    %9 = vector.shape_cast %8 : vector<8xf32> to vector<8x1xf32>
    %10 = arith.mulf %6, %6 : vector<8x16xf32>
    %cst_9 = arith.constant dense<0.000000e+00> : vector<8xf32>
    %11 = vector.multi_reduction <add>, %10, %cst_9 [1] : vector<8x16xf32> to vector<8xf32>
    %12 = vector.shape_cast %11 : vector<8xf32> to vector<8x1xf32>
    %cst_10 = arith.constant dense<0.000000e+00> : vector<8x8xf32>
    %13 = tpu.matmul %3, %6, %cst_10 {dimension_numbers = #tpu.dot_dimension_numbers<[1], [1], [0], [0], [0, 0, 1, 0], [], []>} : vector<8x16xf32>, vector<8x16xf32>, vector<8x8xf32> -> vector<8x8xf32>
    %14 = tpu.transpose %12, [1, 0] : vector<8x1xf32> -> vector<1x8xf32>
    %15 = vector.broadcast %9 : vector<8x1xf32> to vector<8x8xf32>
    %16 = vector.broadcast %14 : vector<1x8xf32> to vector<8x8xf32>
    %17 = arith.addf %15, %16 : vector<8x8xf32>
    %cst_11 = arith.constant 2.000000e+00 : f32
    %18 = vector.broadcast %cst_11 : f32 to vector<8x8xf32>
    %19 = arith.mulf %18, %13 : vector<8x8xf32>
    %20 = arith.subf %17, %19 : vector<8x8xf32>
    %cst_12 = arith.constant 0.000000e+00 : f32
    %21 = vector.broadcast %cst_12 : f32 to vector<8x8xf32>
    %22 = arith.maximumf %20, %21 : vector<8x8xf32>
    %c0_13 = arith.constant 0 : index
    %c0_14 = arith.constant 0 : index
    %c0_15 = arith.constant 0 : index
    %23 = vector.load %arg6[%c0_13, %c0_14, %c0_15] : memref<1x8x8xf32, #tpu.memory_space<vmem>>, vector<1x8x8xf32>
    %24 = vector.shape_cast %23 : vector<1x8x8xf32> to vector<8x8xf32>
    %25 = vector.shape_cast %22 : vector<8x8xf32> to vector<1x8x8xf32>
    tpu.vector_store %arg6[%c0_13, %c0_14, %c0_15], %25 {strides = array<i32>} : memref<1x8x8xf32, #tpu.memory_space<vmem>>, vector<1x8x8xf32>,
    return
  }
  func.func @transform_0(%arg0: i32, %arg1: i32, %arg2: i32) -> (i32, i32, i32) {
    %c0_i32 = arith.constant 0 : i32
    %c0_i32_0 = arith.constant 0 : i32
    return %arg1, %arg0, %c0_i32 : i32, i32, i32
  }
  func.func @transform_1(%arg0: i32, %arg1: i32, %arg2: i32) -> (i32, i32, i32) {
    %c0_i32 = arith.constant 0 : i32
    %c0_i32_0 = arith.constant 0 : i32
    return %arg1, %arg2, %c0_i32 : i32, i32, i32
  }
  func.func @transform_2(%arg0: i32, %arg1: i32, %arg2: i32) -> (i32, i32) {
    %c0_i32 = arith.constant 0 : i32
    %c0_i32_0 = arith.constant 0 : i32
    %c0_i32_1 = arith.constant 0 : i32
    return %c0_i32, %c0_i32_0 : i32, i32
  }
  func.func @transform_3(%arg0: i32, %arg1: i32, %arg2: i32) -> (i32, i32, i32) {
    %c0_i32 = arith.constant 0 : i32
    return %arg1, %arg0, %arg2 : i32, i32, i32
  }
}

</mosaic_0001>

<bundles_post_ra>
// kernel: tpu_custom_call.1
= control target key start
LH: loop header
LB: loop body
LE: loop exit
PB: predicated region body
PF: predicated region fallthrough
CT: control target
= control target key end

     0   :  { %8 = vsyncpa [#allocation3], 0  ;;  %s973_s0 = inlined_call_operand.vmem [shape: f32[2,8,32], index: 0, kind: input, shape index: {}]   ;;  %s974_s1 = inlined_call_operand.vmem [shape: f32[2,8,32], index: 1, kind: input, shape index: {}]   ;;  %s975_s2 = inlined_call_operand.vmem [shape: f32[32,16], index: 2, kind: input, shape index: {}]   ;;  %s976_s3 = inlined_call_operand.hbm [shape: f32[2,8,8], index: 3, kind: output, shape index: {}]  }
   0x1   :  { %10 = vsyncpa [#allocation3 + $0x1], 0  ;;  %s843_s12 = smov 0   ;;  %s845_s13 = smov 0  }
   0x2   :  { %s847_s14 = smov 0   ;;  %s849_s15 = smov 0  }
   0x3   :  { %s851_s16 = smov 0   ;;  %s853_s17 = smov 0  }
   0x4 LB: > { %s614_s18 = sadd.s32 4294967295, %s817_s17   ;;  %s615_s19 = sadd.s32 4294967294, %s817_s17   ;;  %s817_s17 = sphi %s853_s17, %s16_s17   ;;  %s813_s16 = sphi %s851_s16, %s983_s16   ;;  %s809_s15 = sphi %s849_s15, %s982_s15   ;;  %s805_s14 = sphi %s847_s14, %s981_s14   ;;  %s801_s13 = sphi %s845_s13, %s980_s13   ;;  %s797_s12 = sphi %s843_s12, %s979_s12  }
   0x5   : > { %s31_s20 = sadd.s32 1, %s813_s16  ;;  %s123_s21 = sadd.s32 1, %s805_s14 }
   0x6   : > { %p33_p0 = scmp.ge.s32.totalorder %s31_s20, 2  ;;  %p133_p1 = scmp.ne.s32.totalorder %s805_s14, %s801_s13 }
   0x7   : > { %p134_p2 = scmp.eq.s32.totalorder %s614_s18, 1  ;;  %p139_p3 = scmp.ne.s32.totalorder %s801_s13, %s797_s12 }
   0x8   : > { %s985_s20 = smov (%p33_p0, %s31_s20), 0  ;;  %p140_p5 = scmp.eq.s32.totalorder %s615_s19, 1 }
   0x9   : > { %p883_p4 = por %p134_p2, %p133_p1  ;;  %s116_s23 = ssub.s32 %s813_s16, %s985_s20 }
   0xa   : > { %p618_p6 = scmp.ge.s32.totalorder %s817_s17, 1  ;;  %p121_p7 = scmp.eq.s32.totalorder %s116_s23, 0 }
   0xb   : > { %p890_p8 = por %p140_p5, %p139_p3  ;;  %p181_p9 = scmp.lt.s32.totalorder %s817_s17, 3 }
   0xc   : > { %s896_s25 = scalar_select %p121_p7, %s805_s14, %s123_s21  }
   0xd   : > { %p182_p10 = pnand %p618_p6, %p181_p9 }
   0xe   : > { %v228_v0 = vld [vmem:[%s975_s2] sm:$0xff] (!%p182_p10)  ;;  %v229_v1 = vld [vmem:[%s975_s2 + $0x8] sm:$0xff] (!%p182_p10)  ;;  %v230_v2 = vld [vmem:[%s975_s2 + $0x10] sm:$0xff] (!%p182_p10)  ;;  %v819_v3 = vmov (!%p182_p10), 0.0|0.0   ;;  %vm820_vm0 = vmmov (!%p182_p10), 0   ;;  %v821_v6 = vmov (!%p182_p10), 0.0   ;;  %v498_v21 = vlaneseq (!%p182_p10) }
   0xf   : > { %185 = sbr.rel (%p182_p10) target bundleno = 535 (0x217), region = 32  ;;  %675 = vmatprep.subr.bf16.mxu1 (!%p182_p10), %v819_v3  ;;  %v670_v4 = vpack.c.bf16 (!%p182_p10), %v229_v1, %v228_v0  ;;  %v231_v5 = vld [vmem:[%s975_s2 + $0x18] sm:$0xff] (!%p182_p10)  ;;  %661 = vmatprep.mubr.msk.f32.mxu1 (!%p182_p10), %vm820_vm0, %v821_v6  ;;  %p214_p11 = scmp.lt.s32.totalorder (!%p182_p10), %s809_s15, 1  ;;  %vm233_vm1 = vcmask (!%p182_p10), 261120   ;;  %vm382_vm2 = vcmask (!%p182_p10), 130048   ;;  %vm506_vm3 = vcmask (!%p182_p10), 64512  }
  0x10   : > { %669 = vmatprep.subr.bf16.mxu0 (!%p182_p10), %v819_v3  ;;  %650 = vmatprep.mubr.msk.f32.mxu0 (!%p182_p10), %vm820_vm0, %v821_v6  ;;  %v673_v7 = vpack.c.bf16 (!%p182_p10), %v231_v5, %v230_v2  ;;  %v499_v22 = vshrl.u32 (!%p182_p10), %v498_v21, 7  ;;  %s211_s23 = sand.u32 (!%p182_p10), 1, %s801_s13   ;;  %s627_s27 = sshll.u32 (!%p182_p10), %s809_s15, 7 }
  0x11   : > { %677 = vmatpush3.bf16.msra.mxu1 (!%p182_p10), %v670_v4  ;;  %671 = vmatpush3.bf16.msra.mxu0 (!%p182_p10), %v670_v4  ;;  %s619_s26 = sshll.u32 (!%p182_p10), %s211_s23, 3  ;;  %s926_s5 = scalar_lea.hbm (!%p182_p10), %s976_s3, %s627_s27 }
  0x12   : > { %678 = vmatprep.subr.bf16.mxu1 (!%p182_p10), %v819_v3  ;;  %672 = vmatprep.subr.bf16.mxu0 (!%p182_p10), %v819_v3  ;;  %v500_v23 = vsub.s32 (!%p182_p10), 0, %v499_v22  ;;  %s213_s28 = scalar_lea.vmem (!%p182_p10), [#allocation2], %s619_s26  ;;  %s509_s6 = scalar_lea.sflag (!%p182_p10), [#allocation3], %s211_s23 }
  0x13   : > { %s524_s29 = sshll.u32 (!%p182_p10), %s213_s28, 4  ;;  %s928_s29 = int_to_ptr.vmem [resolvable:$true] %s524_s29 }
  0x15   : > { %680 = vmatpush3.bf16.msra.mxu1 (!%p182_p10), %v673_v7  ;;  %674 = vmatpush3.bf16.msra.mxu0 (!%p182_p10), %v673_v7 }
  0x16   : > { %s215_s7 = scalar_select %p214_p11, %s809_s15, 1  ;;  %664 = vmatprep.subr.mxu0 %v821_v6 }
  0x17   : > { %s822_s15 = smov [#allocation2]  }
  0x18   : > { %s620_s8 = sshll.u32 %s215_s7, 3  ;;  %s739_s7 = scalar_lea.vmem %s928_s29, 128 }
  0x19   : > { %s227_s11 = scalar_lea.vmem %s974_s1, %s620_s8  ;;  %s220_s21 = scalar_lea.vmem %s973_s0, %s620_s8 }
  0x1a   : > { %v307_v8 = vld [vmem:[%s227_s11] sm:$0xff]  ;;  %p740_p12 = scmp.ne.s32.totalorder %s928_s29, %s739_s7  ;;  %s743_s8 = sshll.u32 %s822_s15, 4  ;;  %s744_s8 = int_to_ptr.vmem [resolvable:$false] %s743_s8 }
  0x1b   : > { %v232_v9 = vld [vmem:[%s220_s21] sm:$0xff]  ;;  %662 = vmatmul.mubr.msk.f32.vlgmr.msra.gmra.mrb[0].mxu1 %vm233_vm1, %v307_v8  ;;  %s745_s9 = scalar_lea.vmem %s744_s8, 256  ;;  %p746_p1 = scmp.lt.s32.totalorder %s928_s29, %s744_s8 }
  0x1c   : > { %651 = vmatmul.mubr.msk.f32.vlgmr.msra.gmra.mrb[0].mxu0 %vm233_vm1, %v232_v9  ;;  %p741_p13 = pnand %p740_p12, %p883_p4  ;;  %p747_p2 = scmp.lt.s32.totalorder %s745_s9, %s739_s7 }
  0x1d   : > { %666 = vmatprep.mubr.msk.f32.mxu0 %vm820_vm0, %v821_v6 }
  0x1e   : > { %p742_p0 = pneg %p741_p13  ;;  %p748_p3 = por %p747_p2, %p746_p1 }
  0x20   : > { %p749_p5 = pnand %p748_p3, %p742_p0 }
  0xee   : > { %v377_v10 = vpop.f32.mrb[0].mxu1 }
  0xef   : > { %v303_v11 = vpop.f32.mrb[0].mxu0  ;;  %v663_v12 = vpop.f32.mrb[1].mxu1  ;;  %665 = vmatpush3.xpose.msk.msra.mxu0 %vm382_vm2, %v377_v10  ;;  %v386_v13 = vmul.f32 %v377_v10, %v377_v10 }
  0xf0   : > { %v381_v14 = vmul.f32 %v303_v11, %v303_v11  ;;  %v652_v15 = vpop.f32.mrb[1].mxu0 }
  0xf1   : > { %v387_v16 = vsel %vm382_vm2, %v386_v13, 0.0 }
  0xf2   : > { %388 = vadd.xlane.f32.xlu0 %v387_v16  ;;  %667 = vmatmul.mubr.msk.f32.vlgmr.msra.gmra.mrb[2].mxu0 %vm382_vm2, %v303_v11  ;;  %v383_v17 = vsel %vm382_vm2, %v381_v14, 0.0 }
  0xf6   : > { %384 = vadd.xlane.f32.xlu0 %v383_v17 }
 0x17f   : > { %v389_v18 = vpop.xlane.xlu0 %388 }
 0x180   : > { %466 = vxpose.xlu1.b32.start.end [1/1] (short) (narrow) %v389_v18, 8 }
 0x183   : > { %v385_v27 = vpop.xlane.xlu0 %384 }
 0x1c5   : > { %v462_v19 = vpop.f32.mrb[2].mxu0 }
 0x1c6   : > { %v668_v20 = vpop.f32.mrb[3].mxu0  ;;  %v503_v26 = vmul.f32 2.0, %v462_v19 }
 0x200   : > { %v482_v24 = vpop.trf.xlu1 }
 0x201   : > { %v501_v25 = vrot.slane %v482_v24, %v500_v23 }
 0x203   : > { %v502_v28 = vadd.f32 %v501_v25, %v385_v27 }
 0x205   : > { %v504_v29 = vsub.f32 %v502_v28, %v503_v26 }
 0x207   : > { %v505_v30 = vmax.f32 %v504_v29, 0.0 }
 0x209   : > { %507 = vst.msk [vmem:[%s213_s28] sm:$0xff] %vm506_vm3, %v505_v30 }
 0x20a   : > { %752 = shalt.err (!%p749_p5)
}
 0x20b   : > { %s753_s10 = scalar_lea.hbm %s926_s5, 128  ;;  %s757_s19 = scalar_lea.hbm %s976_s3, 256 }
 0x20c   : > { %p754_p6 = scmp.ne.s32.totalorder %s926_s5, %s753_s10  ;;  %p758_p10 = scmp.lt.u32.totalorder %s926_s5, %s976_s3 }
 0x20d   : > { %p759_p11 = scmp.lt.u32.totalorder %s757_s19, %s753_s10  ;;  %p761_p13 = scmp.lt.u32.totalorder %s753_s10, %s926_s5 }
 0x20e   : > { %p755_p7 = pnand %p754_p6, %p883_p4 }
 0x20f   : > { %p760_p12 = por %p759_p11, %p758_p10 }
 0x210   : > { %p756_p9 = pneg %p755_p7 }
 0x211   : > { %p762_p0 = por %p761_p13, %p760_p12 }
 0x213   : > { %p763_p1 = pnand %p762_p0, %p756_p9 }
 0x215   : > { %766 = shalt.err (!%p763_p1)
}
 0x216   : > { %681 = dma.vmem_to_hbm [thread:$0]  (%p883_p4), %s928_s29, 128, %s926_s5, %s509_s6  }
 0x217 PF: > { %p687_p2 = scmp.ge.s32.totalorder %s817_s17, 2  ;;  %s536_s26 = sand.u32 1, %s797_s12  }
 0x218   : > { %s537_s27 = scalar_lea.sflag [#allocation3], %s536_s26 }
 0x219   : > { %p684_p3 = pnand %p687_p2, %p890_p8 }
 0x21b   : > { %792 = dma.done.wait (!%p684_p3), %s537_s27, 128  }
 0x21c   : > { %794 = vsyncadd (!%p684_p3), %s537_s27, 4294967168  ;;  %s16_s17 = sadd.s32 1, %s817_s17   ;;  %s979_s12 = smov %s801_s13 }
 0x21d   : > { %p13_p5 = scmp.ge.s32.totalorder %s16_s17, 4   ;;  %s980_s13 = smov %s805_s14 }
 0x21e   : > { %s981_s14 = smov %s896_s25  ;;  %s982_s15 = smov %s813_s16 }
 0x21f   : > { %s983_s16 = smov %s985_s20  ;;  %15 = sbr.rel (!%p13_p5) target bundleno = 4 (0x4), region = 70 }
 0x226   :  { %542 = vsyncpa [#allocation3], 1 }
 0x227   :  { %544 = vsyncpa [#allocation3 + $0x1], 1 }

</bundles_post_ra>
